<compile_context>
chip_gen: v7x
topology: tpu7x:2x2x1
jax: 0.10.0
libtpu: 0.0.40
codegen_flags: <defaults>
</compile_context>

<pallas_src>
import jax
import jax.numpy as jnp
import numpy as np
from jax.experimental import pallas as pl
from jax.experimental.pallas import tpu as pltpu


# ----------------------------- in-kernel math ------------------------------

def _erf(x):
    # Numerical-Recipes erfc rational approximation (abs err < 1.2e-7) built
    # only from ops guaranteed to lower on Mosaic (exp/mul/add/abs/where).
    a = jnp.abs(x)
    t = 1.0 / (1.0 + 0.5 * a)
    poly = -1.26551223 + t * (1.00002368 + t * (0.37409196 + t * (0.09678418 +
           t * (-0.18628806 + t * (0.27886807 + t * (-1.13520398 + t * (1.48851587 +
           t * (-0.82215223 + t * 0.17087277))))))))
    erfc_abs = t * jnp.exp(-a * a + poly)
    erf_abs = 1.0 - erfc_abs
    return jnp.where(x >= 0.0, erf_abs, -erf_abs)


def _gelu(x):
    # exact (erf-based) GELU — matches torch.nn.GELU() default.
    return 0.5 * x * (1.0 + _erf(x * 0.7071067811865476))


def _sigmoid(x):
    # sigmoid(x) == 0.5*tanh(0.5*x) + 0.5 : exact identity, tanh goes to the
    # EUP slot and avoids an f32 divide on the VALU.
    return 0.5 * jnp.tanh(0.5 * x) + 0.5


# -------------------------------- kernel -----------------------------------
# All tiles are channels-first: channels on sublanes, pixels on lanes.

def r2lcfg_kernel(x_ref, wh_ref, bh_ref, w1_ref, b1_ref, wt2_ref, wth_ref,
                  bt_ref, o_ref):
    x = x_ref[...]                                            # (Cin, tm)
    # head: Conv1x1(input_dim -> W) + GELU
    h = _gelu(jnp.dot(wh_ref[...], x, preferred_element_type=jnp.float32)
              + bh_ref[...])                                  # (W, tm)
    # ResnetBlock inner path with BN1/BN2 pre-folded into w1/b1:
    #   GELU(BN2(Conv1x1(CS(BN1(h))))) == GELU(w1' @ h + b1')
    g = _gelu(jnp.dot(w1_ref[...], h, preferred_element_type=jnp.float32)
              + b1_ref[...])                                  # (W, tm)
    # tail folded through both skips:
    #   sigmoid(wt @ (w2 @ g + 2*h) + bt) == sigmoid((wt@w2) @ g + (2*wt) @ h + bt)
    o_pre = (jnp.dot(wt2_ref[...], g, preferred_element_type=jnp.float32)
             + jnp.dot(wth_ref[...], h, preferred_element_type=jnp.float32)
             + bt_ref[...])                                   # (Cout, tm)
    o_ref[...] = _sigmoid(o_pre).astype(o_ref.dtype)


# ------------------------------- wrapper ------------------------------------

def _cdiv(a, b):
    return -(-a // b)


def _choose_tile(hw, n_batch, cap=4096):
    """Lane-dense pixel tile (multiple of 128); HW is padded up to a multiple
    of the tile so stores are always unmasked.  Guarantees the parallel grid
    has >= 2 steps (v7x has 2 TensorCores) whenever HW allows it."""
    hw128 = _cdiv(hw, 128) * 128
    cap = max(128, (cap // 128) * 128)
    tm = min(cap, hw128)
    if n_batch * _cdiv(hw128, tm) < 2 and hw128 > 128:
        tm = max(128, _cdiv(hw128 // 2, 128) * 128)
    hw_pad = _cdiv(hw, tm) * tm
    return tm, hw_pad


def r2lcfg_forward(x_nchw, kparams, *, tm_cap=4096):
    N, Cin, H, Wsp = x_nchw.shape
    HW = H * Wsp
    Wch = kparams["wh"].shape[0]
    Cout = kparams["wt2"].shape[0]

    tm, hw_pad = _choose_tile(HW, N, tm_cap)
    # NCHW is already channels-first: a pure reshape (no transpose), then a
    # zero-pad of the pixel axis up to a multiple of the lane tile.
    x3d = x_nchw.reshape(N, Cin, HW)
    if hw_pad != HW:
        x3d = jnp.pad(x3d, ((0, 0), (0, 0), (0, hw_pad - HW)))
    grid = (N, hw_pad // tm)

    def resident(shape):
        # Weights / biases: same (0, 0) block every step -> resident in VMEM.
        # (Buffered(1) would only save a few KiB; not worth the tuning.)
        return pl.BlockSpec(shape, lambda n, m: (0, 0))

    out3d = pl.pallas_call(
        r2lcfg_kernel,
        out_shape=jax.ShapeDtypeStruct((N, Cout, hw_pad), jnp.float32),
        grid_spec=pltpu.PrefetchScalarGridSpec(
            num_scalar_prefetch=0,
            grid=grid,
            in_specs=[
                pl.BlockSpec((None, Cin, tm), lambda n, m: (n, 0, m)),  # x tile
                resident((Wch, Cin)), resident((Wch, 1)),               # head W, b
                resident((Wch, Wch)), resident((Wch, 1)),               # folded conv1 W, b
                resident((Cout, Wch)),                                  # wt @ w2
                resident((Cout, Wch)),                                  # 2 * wt
                resident((Cout, 1)),                                    # tail b
            ],
            out_specs=pl.BlockSpec((None, Cout, tm), lambda n, m: (n, 0, m)),
        ),
        compiler_params=pltpu.CompilerParams(
            dimension_semantics=("parallel", "parallel")),
    )(x3d, kparams["wh"], kparams["bh"], kparams["w1"], kparams["b1"],
      kparams["wt2"], kparams["wth"], kparams["bt"])

    return out3d[:, :, :HW].reshape(N, Cout, H, Wsp)


# --------------------- deterministic parameter setup ------------------------

def init_raw_params(key, input_dim, width, output_dim):
    """PyTorch-native parameters (Conv2d weights as (Cout, Cin), BN stats)."""
    ks = jax.random.split(key, 14)
    nrm = lambda k, shape, s=0.1: jax.random.normal(k, shape, jnp.float32) * s
    return dict(
        w_head=nrm(ks[0], (width, input_dim)),      # Conv2d(input_dim, W, 1)
        b_head=nrm(ks[1], (width,)),
        g1=1.0 + nrm(ks[2], (width,)), be1=nrm(ks[3], (width,)),
        m1=nrm(ks[4], (width,)),
        v1=jax.random.uniform(ks[5], (width,), jnp.float32, 0.5, 1.5),
        w1=nrm(ks[6], (width, width)),              # Conv2d(W, W, 1, bias=False)
        g2=1.0 + nrm(ks[7], (width,)), be2=nrm(ks[8], (width,)),
        m2=nrm(ks[9], (width,)),
        v2=jax.random.uniform(ks[10], (width,), jnp.float32, 0.5, 1.5),
        w2=nrm(ks[11], (width, width)),             # Conv2d(W, W, 1, bias=False)
        w_tail=nrm(ks[12], (output_dim, width)),    # Conv2d(W, output_dim, 1)
        b_tail=nrm(ks[13], (output_dim,)),
    )


def fold_params(raw, eps=1e-5):
    """Fold eval-mode BN1 (pre-conv1) and BN2 (post-conv1) into conv1, and the
    tail conv through both skip connections (wt@w2, 2*wt)."""
    width = raw["w_head"].shape[0]
    out_dim = raw["w_tail"].shape[0]
    s1 = raw["g1"] / jnp.sqrt(raw["v1"] + eps)
    t1 = raw["be1"] - raw["m1"] * s1
    s2 = raw["g2"] / jnp.sqrt(raw["v2"] + eps)
    t2 = raw["be2"] - raw["m2"] * s2
    # BN2(W1 @ BN1(h)) = (s2 . W1 . s1) @ h + (s2 * (W1 @ t1) + t2)
    w1f = s2[:, None] * raw["w1"] * s1[None, :]
    b1f = s2 * (raw["w1"] @ t1) + t2
    # tail folded through the skips: wt @ (w2 @ g + 2h) = (wt@w2) @ g + (2 wt) @ h
    wt2 = raw["w_tail"] @ raw["w2"]
    wth = 2.0 * raw["w_tail"]
    return dict(
        wh=raw["w_head"], bh=raw["b_head"].reshape(width, 1),
        w1=w1f,           b1=b1f.reshape(width, 1),
        wt2=wt2,          wth=wth,
        wt=raw["w_tail"],
        bt=raw["b_tail"].reshape(out_dim, 1),
    )


# ---------------------------- pure-JAX reference ----------------------------
# Unfused op-by-op reference (head -> BN1 -> CS -> conv1 -> BN2 -> GELU ->
# conv2 -> skips -> tail), so it also validates the BN / tail folding.

def ref_forward(x_nchw, raw, eps=1e-5):
    N, Cin, H, Wsp = x_nchw.shape
    x2d = jnp.transpose(x_nchw, (0, 2, 3, 1)).reshape(-1, Cin)
    gelu = lambda z: 0.5 * z * (1.0 + jax.scipy.special.erf(z * 0.7071067811865476))
    h = gelu(x2d @ raw["w_head"].T + raw["b_head"])
    bn1 = (h - raw["m1"]) / jnp.sqrt(raw["v1"] + eps) * raw["g1"] + raw["be1"]
    c1 = bn1 @ raw["w1"].T                       # channel_selection = identity
    bn2 = (c1 - raw["m2"]) / jnp.sqrt(raw["v2"] + eps) * raw["g2"] + raw["be2"]
    c2 = gelu(bn2) @ raw["w2"].T
    body = h + c2                                # ResnetBlock skip
    y = body + h                                 # outer skip in R2LCFG.forward
    o = jax.nn.sigmoid(y @ raw["w_tail"].T + raw["b_tail"])
    Cout = o.shape[-1]
    return jnp.transpose(o.reshape(N, H, Wsp, Cout), (0, 3, 1, 2))


# --------------------------------- main --------------------------------------

if __name__ == "__main__":
    # args: netdepth=4 (-> n_block=1), netwidth=32, activation_fn='gelu',
    #       use_sr_module=False, cfg=[32, 32]; input_dim=4, output_dim=3.
    input_dim, width, output_dim = 4, 32, 3
    key = jax.random.PRNGKey(0)
    k_x, k_p = jax.random.split(key)
    x = jax.random.normal(k_x, (2, input_dim, 16, 16), jnp.float32)

    raw = init_raw_params(k_p, input_dim, width, output_dim)
    kparams = fold_params(raw)

    out = jax.block_until_ready(r2lcfg_forward(x, kparams))
    ref = jax.block_until_ready(ref_forward(x, raw))

    assert out.shape == (2, output_dim, 16, 16)
    np.testing.assert_allclose(np.asarray(out), np.asarray(ref),
                               rtol=1e-5, atol=1e-5)
    print("KERNEL_OK")
</pallas_src>

<mosaic_0001>
module attributes {stable_mosaic.version = 11 : i64} {
  func.func @r2lcfg_kernel(%arg0: i32, %arg1: i32, %arg2: memref<1x4x256xf32, #tpu.memory_space<vmem>>, %arg3: memref<32x4xf32, #tpu.memory_space<vmem>>, %arg4: memref<32x1xf32, #tpu.memory_space<vmem>>, %arg5: memref<32x32xf32, #tpu.memory_space<vmem>>, %arg6: memref<32x1xf32, #tpu.memory_space<vmem>>, %arg7: memref<3x32xf32, #tpu.memory_space<vmem>>, %arg8: memref<3x32xf32, #tpu.memory_space<vmem>>, %arg9: memref<3x1xf32, #tpu.memory_space<vmem>>, %arg10: memref<1x3x256xf32, #tpu.memory_space<vmem>>) attributes {dimension_semantics = [#tpu.dimension_semantics<parallel>, #tpu.dimension_semantics<parallel>], iteration_bounds = array<i64: 2, 1>, scalar_prefetch = 0 : i64, scratch_operands = 0 : i64, tpu.core_type = #tpu.core_type<tc>, window_params = [{transform_indices = @transform_0, window_bounds = array<i64: 1, 4, 256>}, {pipeline_mode = #tpu.pipeline_mode<synchronous>, transform_indices = @transform_1, window_bounds = array<i64: 32, 4>}, {pipeline_mode = #tpu.pipeline_mode<synchronous>, transform_indices = @transform_2, window_bounds = array<i64: 32, 1>}, {pipeline_mode = #tpu.pipeline_mode<synchronous>, transform_indices = @transform_3, window_bounds = array<i64: 32, 32>}, {pipeline_mode = #tpu.pipeline_mode<synchronous>, transform_indices = @transform_4, window_bounds = array<i64: 32, 1>}, {pipeline_mode = #tpu.pipeline_mode<synchronous>, transform_indices = @transform_5, window_bounds = array<i64: 3, 32>}, {pipeline_mode = #tpu.pipeline_mode<synchronous>, transform_indices = @transform_6, window_bounds = array<i64: 3, 32>}, {pipeline_mode = #tpu.pipeline_mode<synchronous>, transform_indices = @transform_7, window_bounds = array<i64: 3, 1>}, {transform_indices = @transform_8, window_bounds = array<i64: 1, 3, 256>}]} {
    %c0 = arith.constant 0 : index
    %c0_0 = arith.constant 0 : index
    %c0_1 = arith.constant 0 : index
    %0 = vector.load %arg2[%c0, %c0_0, %c0_1] : memref<1x4x256xf32, #tpu.memory_space<vmem>>, vector<1x4x256xf32>
    %1 = vector.shape_cast %0 : vector<1x4x256xf32> to vector<4x256xf32>
    %c0_2 = arith.constant 0 : index
    %c0_3 = arith.constant 0 : index
    %2 = vector.load %arg3[%c0_2, %c0_3] : memref<32x4xf32, #tpu.memory_space<vmem>>, vector<32x4xf32>
    %cst = arith.constant dense<0.000000e+00> : vector<32x256xf32>
    %3 = tpu.matmul %2, %1, %cst {dimension_numbers = #tpu.dot_dimension_numbers<[1], [0], [0], [1], [0, 0, 1, 1], [], []>} : vector<32x4xf32>, vector<4x256xf32>, vector<32x256xf32> -> vector<32x256xf32>
    %c0_4 = arith.constant 0 : index
    %c0_5 = arith.constant 0 : index
    %4 = vector.load %arg4[%c0_4, %c0_5] : memref<32x1xf32, #tpu.memory_space<vmem>>, vector<32x1xf32>
    %5 = vector.broadcast %4 : vector<32x1xf32> to vector<32x256xf32>
    %6 = arith.addf %3, %5 : vector<32x256xf32>
    %cst_6 = arith.constant 5.000000e-01 : f32
    %7 = vector.broadcast %cst_6 : f32 to vector<32x256xf32>
    %8 = arith.mulf %7, %6 : vector<32x256xf32>
    %cst_7 = arith.constant 0.707106769 : f32
    %9 = vector.broadcast %cst_7 : f32 to vector<32x256xf32>
    %10 = arith.mulf %6, %9 : vector<32x256xf32>
    %11 = math.absf %10 : vector<32x256xf32>
    %cst_8 = arith.constant 5.000000e-01 : f32
    %12 = vector.broadcast %cst_8 : f32 to vector<32x256xf32>
    %13 = arith.mulf %12, %11 : vector<32x256xf32>
    %cst_9 = arith.constant 1.000000e+00 : f32
    %14 = vector.broadcast %cst_9 : f32 to vector<32x256xf32>
    %15 = arith.addf %14, %13 : vector<32x256xf32>
    %cst_10 = arith.constant 1.000000e+00 : f32
    %16 = vector.broadcast %cst_10 : f32 to vector<32x256xf32>
    %17 = arith.divf %16, %15 : vector<32x256xf32>
    %cst_11 = arith.constant 0.170872763 : f32
    %18 = vector.broadcast %cst_11 : f32 to vector<32x256xf32>
    %19 = arith.mulf %17, %18 : vector<32x256xf32>
    %cst_12 = arith.constant -0.822152256 : f32
    %20 = vector.broadcast %cst_12 : f32 to vector<32x256xf32>
    %21 = arith.addf %20, %19 : vector<32x256xf32>
    %22 = arith.mulf %17, %21 : vector<32x256xf32>
    %cst_13 = arith.constant 1.48851585 : f32
    %23 = vector.broadcast %cst_13 : f32 to vector<32x256xf32>
    %24 = arith.addf %23, %22 : vector<32x256xf32>
    %25 = arith.mulf %17, %24 : vector<32x256xf32>
    %cst_14 = arith.constant -1.13520396 : f32
    %26 = vector.broadcast %cst_14 : f32 to vector<32x256xf32>
    %27 = arith.addf %26, %25 : vector<32x256xf32>
    %28 = arith.mulf %17, %27 : vector<32x256xf32>
    %cst_15 = arith.constant 0.278868079 : f32
    %29 = vector.broadcast %cst_15 : f32 to vector<32x256xf32>
    %30 = arith.addf %29, %28 : vector<32x256xf32>
    %31 = arith.mulf %17, %30 : vector<32x256xf32>
    %cst_16 = arith.constant -0.186288059 : f32
    %32 = vector.broadcast %cst_16 : f32 to vector<32x256xf32>
    %33 = arith.addf %32, %31 : vector<32x256xf32>
    %34 = arith.mulf %17, %33 : vector<32x256xf32>
    %cst_17 = arith.constant 0.0967841818 : f32
    %35 = vector.broadcast %cst_17 : f32 to vector<32x256xf32>
    %36 = arith.addf %35, %34 : vector<32x256xf32>
    %37 = arith.mulf %17, %36 : vector<32x256xf32>
    %cst_18 = arith.constant 0.374091953 : f32
    %38 = vector.broadcast %cst_18 : f32 to vector<32x256xf32>
    %39 = arith.addf %38, %37 : vector<32x256xf32>
    %40 = arith.mulf %17, %39 : vector<32x256xf32>
    %cst_19 = arith.constant 1.00002372 : f32
    %41 = vector.broadcast %cst_19 : f32 to vector<32x256xf32>
    %42 = arith.addf %41, %40 : vector<32x256xf32>
    %43 = arith.mulf %17, %42 : vector<32x256xf32>
    %cst_20 = arith.constant -1.26551223 : f32
    %44 = vector.broadcast %cst_20 : f32 to vector<32x256xf32>
    %45 = arith.addf %44, %43 : vector<32x256xf32>
    %cst_21 = arith.constant 0.000000e+00 : f32
    %46 = vector.broadcast %cst_21 : f32 to vector<32x256xf32>
    %47 = arith.subf %46, %11 : vector<32x256xf32>
    %48 = arith.mulf %47, %11 : vector<32x256xf32>
    %49 = arith.addf %48, %45 : vector<32x256xf32>
    %50 = math.exp %49 : vector<32x256xf32>
    %51 = arith.mulf %17, %50 : vector<32x256xf32>
    %cst_22 = arith.constant 1.000000e+00 : f32
    %52 = vector.broadcast %cst_22 : f32 to vector<32x256xf32>
    %53 = arith.subf %52, %51 : vector<32x256xf32>
    %cst_23 = arith.constant 0.000000e+00 : f32
    %54 = vector.broadcast %cst_23 : f32 to vector<32x256xf32>
    %55 = arith.cmpf oge, %10, %54 : vector<32x256xf32>
    %cst_24 = arith.constant 0.000000e+00 : f32
    %56 = vector.broadcast %cst_24 : f32 to vector<32x256xf32>
    %57 = arith.subf %56, %53 : vector<32x256xf32>
    %58 = arith.select %55, %53, %57 : vector<32x256xi1>, vector<32x256xf32>
    %cst_25 = arith.constant 1.000000e+00 : f32
    %59 = vector.broadcast %cst_25 : f32 to vector<32x256xf32>
    %60 = arith.addf %59, %58 : vector<32x256xf32>
    %61 = arith.mulf %8, %60 : vector<32x256xf32>
    %c0_26 = arith.constant 0 : index
    %c0_27 = arith.constant 0 : index
    %62 = vector.load %arg5[%c0_26, %c0_27] : memref<32x32xf32, #tpu.memory_space<vmem>>, vector<32x32xf32>
    %cst_28 = arith.constant dense<0.000000e+00> : vector<32x256xf32>
    %63 = tpu.matmul %62, %61, %cst_28 {dimension_numbers = #tpu.dot_dimension_numbers<[1], [0], [0], [1], [0, 0, 1, 1], [], []>} : vector<32x32xf32>, vector<32x256xf32>, vector<32x256xf32> -> vector<32x256xf32>
    %c0_29 = arith.constant 0 : index
    %c0_30 = arith.constant 0 : index
    %64 = vector.load %arg6[%c0_29, %c0_30] : memref<32x1xf32, #tpu.memory_space<vmem>>, vector<32x1xf32>
    %65 = vector.broadcast %64 : vector<32x1xf32> to vector<32x256xf32>
    %66 = arith.addf %63, %65 : vector<32x256xf32>
    %cst_31 = arith.constant 5.000000e-01 : f32
    %67 = vector.broadcast %cst_31 : f32 to vector<32x256xf32>
    %68 = arith.mulf %67, %66 : vector<32x256xf32>
    %cst_32 = arith.constant 0.707106769 : f32
    %69 = vector.broadcast %cst_32 : f32 to vector<32x256xf32>
    %70 = arith.mulf %66, %69 : vector<32x256xf32>
    %71 = math.absf %70 : vector<32x256xf32>
    %cst_33 = arith.constant 5.000000e-01 : f32
    %72 = vector.broadcast %cst_33 : f32 to vector<32x256xf32>
    %73 = arith.mulf %72, %71 : vector<32x256xf32>
    %cst_34 = arith.constant 1.000000e+00 : f32
    %74 = vector.broadcast %cst_34 : f32 to vector<32x256xf32>
    %75 = arith.addf %74, %73 : vector<32x256xf32>
    %cst_35 = arith.constant 1.000000e+00 : f32
    %76 = vector.broadcast %cst_35 : f32 to vector<32x256xf32>
    %77 = arith.divf %76, %75 : vector<32x256xf32>
    %cst_36 = arith.constant 0.170872763 : f32
    %78 = vector.broadcast %cst_36 : f32 to vector<32x256xf32>
    %79 = arith.mulf %77, %78 : vector<32x256xf32>
    %cst_37 = arith.constant -0.822152256 : f32
    %80 = vector.broadcast %cst_37 : f32 to vector<32x256xf32>
    %81 = arith.addf %80, %79 : vector<32x256xf32>
    %82 = arith.mulf %77, %81 : vector<32x256xf32>
    %cst_38 = arith.constant 1.48851585 : f32
    %83 = vector.broadcast %cst_38 : f32 to vector<32x256xf32>
    %84 = arith.addf %83, %82 : vector<32x256xf32>
    %85 = arith.mulf %77, %84 : vector<32x256xf32>
    %cst_39 = arith.constant -1.13520396 : f32
    %86 = vector.broadcast %cst_39 : f32 to vector<32x256xf32>
    %87 = arith.addf %86, %85 : vector<32x256xf32>
    %88 = arith.mulf %77, %87 : vector<32x256xf32>
    %cst_40 = arith.constant 0.278868079 : f32
    %89 = vector.broadcast %cst_40 : f32 to vector<32x256xf32>
    %90 = arith.addf %89, %88 : vector<32x256xf32>
    %91 = arith.mulf %77, %90 : vector<32x256xf32>
    %cst_41 = arith.constant -0.186288059 : f32
    %92 = vector.broadcast %cst_41 : f32 to vector<32x256xf32>
    %93 = arith.addf %92, %91 : vector<32x256xf32>
    %94 = arith.mulf %77, %93 : vector<32x256xf32>
    %cst_42 = arith.constant 0.0967841818 : f32
    %95 = vector.broadcast %cst_42 : f32 to vector<32x256xf32>
    %96 = arith.addf %95, %94 : vector<32x256xf32>
    %97 = arith.mulf %77, %96 : vector<32x256xf32>
    %cst_43 = arith.constant 0.374091953 : f32
    %98 = vector.broadcast %cst_43 : f32 to vector<32x256xf32>
    %99 = arith.addf %98, %97 : vector<32x256xf32>
    %100 = arith.mulf %77, %99 : vector<32x256xf32>
    %cst_44 = arith.constant 1.00002372 : f32
    %101 = vector.broadcast %cst_44 : f32 to vector<32x256xf32>
    %102 = arith.addf %101, %100 : vector<32x256xf32>
    %103 = arith.mulf %77, %102 : vector<32x256xf32>
    %cst_45 = arith.constant -1.26551223 : f32
    %104 = vector.broadcast %cst_45 : f32 to vector<32x256xf32>
    %105 = arith.addf %104, %103 : vector<32x256xf32>
    %cst_46 = arith.constant 0.000000e+00 : f32
    %106 = vector.broadcast %cst_46 : f32 to vector<32x256xf32>
    %107 = arith.subf %106, %71 : vector<32x256xf32>
    %108 = arith.mulf %107, %71 : vector<32x256xf32>
    %109 = arith.addf %108, %105 : vector<32x256xf32>
    %110 = math.exp %109 : vector<32x256xf32>
    %111 = arith.mulf %77, %110 : vector<32x256xf32>
    %cst_47 = arith.constant 1.000000e+00 : f32
    %112 = vector.broadcast %cst_47 : f32 to vector<32x256xf32>
    %113 = arith.subf %112, %111 : vector<32x256xf32>
    %cst_48 = arith.constant 0.000000e+00 : f32
    %114 = vector.broadcast %cst_48 : f32 to vector<32x256xf32>
    %115 = arith.cmpf oge, %70, %114 : vector<32x256xf32>
    %cst_49 = arith.constant 0.000000e+00 : f32
    %116 = vector.broadcast %cst_49 : f32 to vector<32x256xf32>
    %117 = arith.subf %116, %113 : vector<32x256xf32>
    %118 = arith.select %115, %113, %117 : vector<32x256xi1>, vector<32x256xf32>
    %cst_50 = arith.constant 1.000000e+00 : f32
    %119 = vector.broadcast %cst_50 : f32 to vector<32x256xf32>
    %120 = arith.addf %119, %118 : vector<32x256xf32>
    %121 = arith.mulf %68, %120 : vector<32x256xf32>
    %c0_51 = arith.constant 0 : index
    %c0_52 = arith.constant 0 : index
    %122 = vector.load %arg7[%c0_51, %c0_52] : memref<3x32xf32, #tpu.memory_space<vmem>>, vector<3x32xf32>
    %cst_53 = arith.constant dense<0.000000e+00> : vector<3x256xf32>
    %123 = tpu.matmul %122, %121, %cst_53 {dimension_numbers = #tpu.dot_dimension_numbers<[1], [0], [0], [1], [0, 0, 1, 1], [], []>} : vector<3x32xf32>, vector<32x256xf32>, vector<3x256xf32> -> vector<3x256xf32>
    %c0_54 = arith.constant 0 : index
    %c0_55 = arith.constant 0 : index
    %124 = vector.load %arg8[%c0_54, %c0_55] : memref<3x32xf32, #tpu.memory_space<vmem>>, vector<3x32xf32>
    %cst_56 = arith.constant dense<0.000000e+00> : vector<3x256xf32>
    %125 = tpu.matmul %124, %61, %cst_56 {dimension_numbers = #tpu.dot_dimension_numbers<[1], [0], [0], [1], [0, 0, 1, 1], [], []>} : vector<3x32xf32>, vector<32x256xf32>, vector<3x256xf32> -> vector<3x256xf32>
    %126 = arith.addf %123, %125 : vector<3x256xf32>
    %c0_57 = arith.constant 0 : index
    %c0_58 = arith.constant 0 : index
    %127 = vector.load %arg9[%c0_57, %c0_58] : memref<3x1xf32, #tpu.memory_space<vmem>>, vector<3x1xf32>
    %128 = vector.broadcast %127 : vector<3x1xf32> to vector<3x256xf32>
    %129 = arith.addf %126, %128 : vector<3x256xf32>
    %cst_59 = arith.constant 5.000000e-01 : f32
    %130 = vector.broadcast %cst_59 : f32 to vector<3x256xf32>
    %131 = arith.mulf %130, %129 : vector<3x256xf32>
    %132 = math.tanh %131 : vector<3x256xf32>
    %cst_60 = arith.constant 5.000000e-01 : f32
    %133 = vector.broadcast %cst_60 : f32 to vector<3x256xf32>
    %134 = arith.mulf %133, %132 : vector<3x256xf32>
    %cst_61 = arith.constant 5.000000e-01 : f32
    %135 = vector.broadcast %cst_61 : f32 to vector<3x256xf32>
    %136 = arith.addf %134, %135 : vector<3x256xf32>
    %c0_62 = arith.constant 0 : index
    %c0_63 = arith.constant 0 : index
    %c0_64 = arith.constant 0 : index
    %137 = vector.load %arg10[%c0_62, %c0_63, %c0_64] : memref<1x3x256xf32, #tpu.memory_space<vmem>>, vector<1x3x256xf32>
    %138 = vector.shape_cast %137 : vector<1x3x256xf32> to vector<3x256xf32>
    %139 = vector.shape_cast %136 : vector<3x256xf32> to vector<1x3x256xf32>
    tpu.vector_store %arg10[%c0_62, %c0_63, %c0_64], %139 {strides = array<i32>} : memref<1x3x256xf32, #tpu.memory_space<vmem>>, vector<1x3x256xf32>,
    return
  }
  func.func @transform_0(%arg0: i32, %arg1: i32) -> (i32, i32, i32) {
    %c0_i32 = arith.constant 0 : i32
    %c0_i32_0 = arith.constant 0 : i32
    return %arg0, %c0_i32, %arg1 : i32, i32, i32
  }
  func.func @transform_1(%arg0: i32, %arg1: i32) -> (i32, i32) {
    %c0_i32 = arith.constant 0 : i32
    %c0_i32_0 = arith.constant 0 : i32
    %c0_i32_1 = arith.constant 0 : i32
    return %c0_i32, %c0_i32_0 : i32, i32
  }
  func.func @transform_2(%arg0: i32, %arg1: i32) -> (i32, i32) {
    %c0_i32 = arith.constant 0 : i32
    %c0_i32_0 = arith.constant 0 : i32
    %c0_i32_1 = arith.constant 0 : i32
    return %c0_i32, %c0_i32_0 : i32, i32
  }
  func.func @transform_3(%arg0: i32, %arg1: i32) -> (i32, i32) {
    %c0_i32 = arith.constant 0 : i32
    %c0_i32_0 = arith.constant 0 : i32
    %c0_i32_1 = arith.constant 0 : i32
    return %c0_i32, %c0_i32_0 : i32, i32
  }
  func.func @transform_4(%arg0: i32, %arg1: i32) -> (i32, i32) {
    %c0_i32 = arith.constant 0 : i32
    %c0_i32_0 = arith.constant 0 : i32
    %c0_i32_1 = arith.constant 0 : i32
    return %c0_i32, %c0_i32_0 : i32, i32
  }
  func.func @transform_5(%arg0: i32, %arg1: i32) -> (i32, i32) {
    %c0_i32 = arith.constant 0 : i32
    %c0_i32_0 = arith.constant 0 : i32
    %c0_i32_1 = arith.constant 0 : i32
    return %c0_i32, %c0_i32_0 : i32, i32
  }
  func.func @transform_6(%arg0: i32, %arg1: i32) -> (i32, i32) {
    %c0_i32 = arith.constant 0 : i32
    %c0_i32_0 = arith.constant 0 : i32
    %c0_i32_1 = arith.constant 0 : i32
    return %c0_i32, %c0_i32_0 : i32, i32
  }
  func.func @transform_7(%arg0: i32, %arg1: i32) -> (i32, i32) {
    %c0_i32 = arith.constant 0 : i32
    %c0_i32_0 = arith.constant 0 : i32
    %c0_i32_1 = arith.constant 0 : i32
    return %c0_i32, %c0_i32_0 : i32, i32
  }
  func.func @transform_8(%arg0: i32, %arg1: i32) -> (i32, i32, i32) {
    %c0_i32 = arith.constant 0 : i32
    %c0_i32_0 = arith.constant 0 : i32
    return %arg0, %c0_i32, %arg1 : i32, i32, i32
  }
}

</mosaic_0001>

<bundles_post_ra>
// kernel: tpu_custom_call.1
= control target key start
LH: loop header
LB: loop body
LE: loop exit
PB: predicated region body
PF: predicated region fallthrough
CT: control target
= control target key end

     0   :  { %s1684_s27 = smov 0   ;;  %s1686_s28 = smov 0   ;;  %s2233_s0 = inlined_call_operand.vmem [shape: f32[2,4,256], index: 0, kind: input, shape index: {}]   ;;  %s2234_s1 = inlined_call_operand.vmem [shape: f32[32,4], index: 1, kind: input, shape index: {}]   ;;  %s2235_s2 = inlined_call_operand.vmem [shape: f32[32,1], index: 2, kind: input, shape index: {}]   ;;  %s2236_s3 = inlined_call_operand.vmem [shape: f32[32,32], index: 3, kind: input, shape index: {}]   ;;  %s2237_s4 = inlined_call_operand.vmem [shape: f32[32,1], index: 4, kind: input, shape index: {}]   ;;  %s2238_s5 = inlined_call_operand.vmem [shape: f32[3,32], index: 5, kind: input, shape index: {}]   ;;  %s2239_s6 = inlined_call_operand.vmem [shape: f32[3,32], index: 6, kind: input, shape index: {}]   ;;  %s2240_s7 = inlined_call_operand.vmem [shape: f32[3,1], index: 7, kind: input, shape index: {}]   ;;  %s2241_s8 = inlined_call_operand.vmem [shape: f32[2,3,256], index: 8, kind: output, shape index: {}]  }
   0x1   :  { %s1688_s29 = smov 0  }
   0x2 LB: > { %s30_s30 = sadd.s32 1, %s1631_s28  ;;  %p1467_p0 = scmp.ge.s32.totalorder %s1635_s29, 1  ;;  %s1635_s29 = sphi %s1688_s29, %s18_s29   ;;  %s1631_s28 = sphi %s1686_s28, %s2243_s28   ;;  %s1627_s27 = sphi %s1684_s27, %s2242_s27  }
   0x3   : > { %p32_p1 = scmp.ge.s32.totalorder %s30_s30, 2  ;;  %p283_p2 = scmp.lt.s32.totalorder %s1635_s29, 3 }
   0x5   : > { %s2245_s30 = smov (%p32_p1, %s30_s30), 0  ;;  %p284_p3 = pnand %p1467_p0, %p283_p2 }
   0x6   : > { %p326_p4 = scmp.lt.s32.totalorder (!%p284_p3), %s1627_s27, 1  ;;  %v1637_v0 = vmov (!%p284_p3), 0.0   ;;  %v350_v1 = vld [vmem:[%s2235_s2] sm:$0xff] (!%p284_p3)  ;;  %v1638_v2 = vmov (!%p284_p3), 0   ;;  %v352_v3 = vld [vmem:[%s2235_s2 + $0x10] sm:$0xff] (!%p284_p3)  ;;  %v351_v4 = vld [vmem:[%s2235_s2 + $0x8] sm:$0xff] (!%p284_p3) }
   0x7   : > { %287 = sbr.rel (%p284_p3) target bundleno = 888 (0x378), region = 52  ;;  %458 = vmatprep.mubr.f32.mxu0 (!%p284_p3), %v1637_v0  ;;  %470 = vmatprep.mubr.f32.mxu1 (!%p284_p3), %v1637_v0  ;;  %v353_v5 = vld [vmem:[%s2235_s2 + $0x18] sm:$0xff] (!%p284_p3)  ;;  %vm389_vm0 = vcmask (!%p284_p3), 1043456   ;;  %v346_v8 = vld [vmem:[%s2234_s1] sm:$0xff] (!%p284_p3)  ;;  %vm376_vm1 = vcmask (!%p284_p3), 31744   ;;  %v348_v9 = vld [vmem:[%s2234_s1 + $0x10] sm:$0xff] (!%p284_p3) }
   0x8   : > { %1542 = vset.pattern.permute.xlu0 (!%p284_p3), %v1638_v2  ;;  %1543 = vset.pattern.permute.xlu1 (!%p284_p3), %v1638_v2  ;;  %v783_v10 = vld [vmem:[%s2237_s4] sm:$0xff] (!%p284_p3)  ;;  %v784_v11 = vld [vmem:[%s2237_s4 + $0x8] sm:$0xff] (!%p284_p3)  ;;  %v349_v13 = vld [vmem:[%s2234_s1 + $0x18] sm:$0xff] (!%p284_p3)  ;;  %vm807_vm10 = vcmask (!%p284_p3), 261120  }
   0x9   : > { %356 = vperm.xlu0 (!%p284_p3), %1542, %v350_v1   ;;  %366 = vperm.xlu1 (!%p284_p3), %1543, %v352_v3   ;;  %v347_v12 = vld [vmem:[%s2234_s1 + $0x8] sm:$0xff] (!%p284_p3)  ;;  %v785_v14 = vld [vmem:[%s2237_s4 + $0x10] sm:$0xff] (!%p284_p3)  ;;  %v786_v15 = vld [vmem:[%s2237_s4 + $0x18] sm:$0xff] (!%p284_p3) }
   0xa   : > { %v1355_v16 = vld [vmem:[%s2240_s7] sm:$0x7] (!%p284_p3) }
   0xd   : > { %361 = vperm.xlu0 (!%p284_p3), %1542, %v351_v4   ;;  %371 = vperm.xlu1 (!%p284_p3), %1543, %v353_v5  }
   0xe   : > { %s2247_s27 = smov (!%p326_p4, %s1627_s27), 1 }
   0xf   : > { %s1486_s13 = sshll.u32 %s2247_s27, 3 }
  0x10   : > { %s333_s20 = scalar_lea.vmem %s2233_s0, %s1486_s13  ;;  %s343_s19 = scalar_lea.vmem %s2241_s8, %s1486_s13 }
  0x11   : > { %v345_v6 = vld [vmem:[%s333_s20] sm:$0xff]  ;;  %789 = vperm.xlu0 %1542, %v783_v10   ;;  %794 = vperm.xlu1 %1543, %v784_v11  }
  0x12   : > { %v375_v7 = vcombine.high %v345_v6, %v345_v6 }
  0x14   : > { %1472 = vmatprep.subr.msk.mxu0 %vm389_vm0, %v375_v7  ;;  %1512 = vmatprep.subr.msk.mxu1 %vm389_vm0, %v375_v7 }
  0x15   : > { %1473 = vmatpush1.msk.msra.mxu0 %vm389_vm0, %v345_v6  ;;  %1513 = vmatpush1.msk.msra.mxu1 %vm389_vm0, %v345_v6 }
  0x16   : > { %1474 = vmatmul.mubr.msk.f32.vlgmr.msra.gmra.mrb[0].mxu0 %vm376_vm1, %v346_v8  ;;  %1476 = vmatmul.mubr.msk.f32.vlgmr.msra.gmra.mrb[0].mxu1 %vm376_vm1, %v348_v9 }
  0x17   : > { %464 = vmatprep.mubr.f32.mxu0 %v1637_v0  ;;  %476 = vmatprep.mubr.f32.mxu1 %v1637_v0 }
  0x18   : > { %799 = vperm.xlu0 %1542, %v785_v14   ;;  %804 = vperm.xlu1 %1543, %v786_v15  }
  0x1a   : > { %1475 = vmatmul.mubr.msk.f32.gmra.mrb[2].mxu0 %vm376_vm1, %v347_v12  ;;  %1477 = vmatmul.mubr.msk.f32.gmra.mrb[2].mxu1 %vm376_vm1, %v349_v13 }
  0x1b   : > { %884 = vmatprep.mubr.f32.mxu1 %v1637_v0  ;;  %1274 = vmatprep.mubr.f32.mxu0 %v1637_v0 }
  0x1c   : > { %1358 = vperm.xlu0 %1542, %v1355_v16  }
  0x88   : > { %v357_v17 = vpop.permute.xlu0 %356  ;;  %v367_v18 = vpop.permute.xlu1 %366 }
  0x8c   : > { %v362_v45 = vpop.permute.xlu0 %361  ;;  %v372_v46 = vpop.permute.xlu1 %371 }
  0xe9   : > { %v460_v19 = vpop.f32.mrb[0].mxu0  ;;  %v472_v20 = vpop.f32.mrb[0].mxu1 }
  0xea   : > { %v1759_v21 = vadd.f32 %v460_v19, %v357_v17  ;;  %v1761_v22 = vadd.f32 %v472_v20, %v367_v18  ;;  %v462_v23 = vpop.f32.mrb[1].mxu0  ;;  %v474_v24 = vpop.f32.mrb[1].mxu1 }
  0xeb   : > { %v1763_v25 = vadd.f32 %v462_v23, %v357_v17  ;;  %v1765_v26 = vadd.f32 %v474_v24, %v367_v18 }
  0xec   : > { %v1768_v27 = vmul.f32 0.70710677, %v1759_v21  ;;  %v1771_v28 = vmul.f32 0.70710677, %v1761_v22 }
  0xed   : > { %v1774_v29 = vmul.f32 0.70710677, %v1763_v25  ;;  %v1777_v30 = vmul.f32 0.70710677, %v1765_v26  ;;  %v466_v37 = vpop.f32.mrb[2].mxu0  ;;  %v478_v38 = vpop.f32.mrb[2].mxu1 }
  0xee   : > { %v1780_v31 = vand.u32 2147483647, %v1768_v27  ;;  %v1783_v32 = vand.u32 2147483647, %v1771_v28  ;;  %v468_v41 = vpop.f32.mrb[3].mxu0  ;;  %v480_v42 = vpop.f32.mrb[3].mxu1  ;;  %v1795_v49 = vadd.f32 %v466_v37, %v362_v45  ;;  %v1797_v50 = vadd.f32 %v478_v38, %v372_v46 }
  0xef   : > { %v1786_v33 = vand.u32 2147483647, %v1774_v29  ;;  %v1789_v34 = vand.u32 2147483647, %v1777_v30  ;;  %v1799_v51 = vadd.f32 %v468_v41, %v362_v45  ;;  %v1801_v52 = vadd.f32 %v480_v42, %v372_v46 }
  0xf0   : > { %v507_v35 = vmul.f32 0.5, %v1780_v31  ;;  %v511_v36 = vmul.f32 0.5, %v1783_v32  ;;  %v1804_v53 = vmul.f32 0.70710677, %v1795_v49  ;;  %v1807_v54 = vmul.f32 0.70710677, %v1797_v50 }
  0xf1   : > { %v508_v39 = vmul.f32 0.5, %v1786_v33  ;;  %v512_v40 = vmul.f32 0.5, %v1789_v34  ;;  %v1810_v55 = vmul.f32 0.70710677, %v1799_v51  ;;  %v1816_v57 = vmul.f32 0.70710677, %v1801_v52 }
  0xf2   : > { %v515_v43 = vadd.f32 1.0, %v507_v35  ;;  %v519_v44 = vadd.f32 1.0, %v511_v36  ;;  %v1813_v56 = vand.u32 2147483647, %v1804_v53  ;;  %v1819_v58 = vand.u32 2147483647, %v1807_v54 }
  0xf3   : > { %v516_v47 = vadd.f32 1.0, %v508_v39  ;;  %v520_v48 = vadd.f32 1.0, %v512_v40  ;;  %v1822_v59 = vand.u32 2147483647, %v1810_v55  ;;  %v1826_v61 = vand.u32 2147483647, %v1816_v57 }
  0xf4   : > { %1545 = vrcp.f32 %v515_v43  ;;  %v509_v60 = vmul.f32 0.5, %v1813_v56  ;;  %v513_v62 = vmul.f32 0.5, %v1819_v58  ;;  %v683_v17 = vsub.f32 0.0, %v1780_v31 }
  0xf5   : > { %1547 = vrcp.f32 %v519_v44  ;;  %v510_v63 = vmul.f32 0.5, %v1822_v59  ;;  %v514_v2 = vmul.f32 0.5, %v1826_v61  ;;  %v687_v18 = vsub.f32 0.0, %v1783_v32 }
  0xf6   : > { %1549 = vrcp.f32 %v516_v47  ;;  %v517_v1 = vadd.f32 1.0, %v509_v60  ;;  %v521_v3 = vadd.f32 1.0, %v513_v62  ;;  %v684_v23 = vsub.f32 0.0, %v1786_v33 }
  0xf7   : > { %1551 = vrcp.f32 %v520_v48  ;;  %v518_v4 = vadd.f32 1.0, %v510_v63  ;;  %v522_v6 = vadd.f32 1.0, %v514_v2  ;;  %v688_v35 = vsub.f32 0.0, %v1789_v34 }
  0xf8   : > { %1553 = vrcp.f32 %v517_v1  ;;  %v1853_v41 = vmul.f32 %v683_v17, %v1780_v31  ;;  %v1856_v42 = vmul.f32 %v687_v18, %v1783_v32  ;;  %v1862_v46 = vmul.f32 %v684_v23, %v1786_v33 }
  0xf9   : > { %1555 = vrcp.f32 %v521_v3  ;;  %v1865_v48 = vmul.f32 %v688_v35, %v1789_v34  ;;  %v685_v63 = vsub.f32 0.0, %v1813_v56  ;;  %vm739_vm2 = vcmp.ge.f32.partialorder %v1768_v27, 0.0 }
  0xfa   : > { %1557 = vrcp.f32 %v518_v4  ;;  %v689_v4 = vsub.f32 0.0, %v1819_v58  ;;  %vm743_vm3 = vcmp.ge.f32.partialorder %v1771_v28, 0.0  ;;  %vm740_vm4 = vcmp.ge.f32.partialorder %v1774_v29, 0.0 }
  0xfb   : > { %1559 = vrcp.f32 %v522_v6  ;;  %vm744_vm5 = vcmp.ge.f32.partialorder %v1777_v30, 0.0  ;;  %vm741_vm6 = vcmp.ge.f32.partialorder %v1804_v53, 0.0  ;;  %vm745_vm7 = vcmp.ge.f32.partialorder %v1807_v54, 0.0 }
  0xfc   : > { %vm742_vm8 = vcmp.ge.f32.partialorder %v1810_v55, 0.0  ;;  %vm746_vm9 = vcmp.ge.f32.partialorder %v1816_v57, 0.0  ;;  %v490_v54 = vmul.f32 0.5, %v1801_v52  ;;  %v781_v52 = vld [vmem:[%s2236_s3 + $0x10] sm:$0xff]  ;;  %v782_v57 = vld [vmem:[%s2236_s3 + $0x18] sm:$0xff] }
  0xfe   : > { %v1831_v5 = vpop.eup %1545 }
  0xff   : > { %v1833_v7 = vpop.eup %1547  ;;  %v539_v8 = vmul.f32 0.17087276, %v1831_v5 }
 0x100   : > { %v1836_v9 = vpop.eup %1549  ;;  %v543_v10 = vmul.f32 0.17087276, %v1833_v7 }
 0x101   : > { %v1839_v11 = vpop.eup %1551  ;;  %v547_v12 = vadd.f32 -0.82215226, %v539_v8  ;;  %v540_v13 = vmul.f32 0.17087276, %v1836_v9 }
 0x102   : > { %v551_v14 = vadd.f32 -0.82215226, %v543_v10  ;;  %v544_v15 = vmul.f32 0.17087276, %v1839_v11  ;;  %v1858_v44 = vpop.eup %1553 }
 0x103   : > { %v555_v16 = vmul.f32 %v1831_v5, %v547_v12  ;;  %v548_v19 = vadd.f32 -0.82215226, %v540_v13  ;;  %v1867_v60 = vpop.eup %1555  ;;  %v541_v32 = vmul.f32 0.17087276, %v1858_v44 }
 0x104   : > { %v559_v20 = vmul.f32 %v1833_v7, %v551_v14  ;;  %v552_v24 = vadd.f32 -0.82215226, %v544_v15  ;;  %v1872_v1 = vpop.eup %1557  ;;  %v545_v33 = vmul.f32 0.17087276, %v1867_v60 }
 0x105   : > { %v563_v36 = vadd.f32 1.4885159, %v555_v16  ;;  %v556_v37 = vmul.f32 %v1836_v9, %v548_v19  ;;  %v1877_v34 = vpop.eup %1559  ;;  %v549_v10 = vadd.f32 -0.82215226, %v541_v32  ;;  %v542_v12 = vmul.f32 0.17087276, %v1872_v1 }
 0x106   : > { %v567_v38 = vadd.f32 1.4885159, %v559_v20  ;;  %v560_v39 = vmul.f32 %v1839_v11, %v552_v24  ;;  %v553_v15 = vadd.f32 -0.82215226, %v545_v33  ;;  %v546_v16 = vmul.f32 0.17087276, %v1877_v34 }
 0x107   : > { %v571_v40 = vmul.f32 %v1831_v5, %v563_v36  ;;  %v564_v43 = vadd.f32 1.4885159, %v556_v37  ;;  %v557_v19 = vmul.f32 %v1858_v44, %v549_v10  ;;  %v550_v20 = vadd.f32 -0.82215226, %v542_v12 }
 0x108   : > { %v575_v45 = vmul.f32 %v1833_v7, %v567_v38  ;;  %v568_v47 = vadd.f32 1.4885159, %v560_v39  ;;  %v561_v35 = vmul.f32 %v1867_v60, %v553_v15  ;;  %v554_v36 = vadd.f32 -0.82215226, %v546_v16 }
 0x109   : > { %v579_v62 = vadd.f32 -1.135204, %v571_v40  ;;  %v572_v31 = vmul.f32 %v1836_v9, %v564_v43  ;;  %v565_v39 = vadd.f32 1.4885159, %v557_v19  ;;  %v558_v40 = vmul.f32 %v1872_v1, %v550_v20 }
 0x10a   : > { %v583_v2 = vadd.f32 -1.135204, %v575_v45  ;;  %v576_v3 = vmul.f32 %v1839_v11, %v568_v47  ;;  %v569_v47 = vadd.f32 1.4885159, %v561_v35 }
 0x10b   : > { %v587_v6 = vmul.f32 %v1831_v5, %v579_v62  ;;  %v580_v8 = vadd.f32 -1.135204, %v572_v31  ;;  %v562_v62 = vmul.f32 %v1877_v34, %v554_v36 }
 0x10c   : > { %v591_v13 = vmul.f32 %v1833_v7, %v583_v2  ;;  %v584_v14 = vadd.f32 -1.135204, %v576_v3  ;;  %v573_v2 = vmul.f32 %v1858_v44, %v565_v39  ;;  %v566_v3 = vadd.f32 1.4885159, %v558_v40 }
 0x10d   : > { %v595_v17 = vadd.f32 0.27886808, %v587_v6  ;;  %v588_v18 = vmul.f32 %v1836_v9, %v580_v8  ;;  %v577_v8 = vmul.f32 %v1867_v60, %v569_v47  ;;  %v570_v10 = vadd.f32 1.4885159, %v562_v62 }
 0x10e   : > { %v599_v23 = vadd.f32 0.27886808, %v591_v13  ;;  %v592_v24 = vmul.f32 %v1839_v11, %v584_v14  ;;  %v581_v14 = vadd.f32 -1.135204, %v573_v2  ;;  %v574_v15 = vmul.f32 %v1872_v1, %v566_v3 }
 0x10f   : > { %v603_v37 = vmul.f32 %v1831_v5, %v595_v17  ;;  %v596_v38 = vadd.f32 0.27886808, %v588_v18  ;;  %v585_v18 = vadd.f32 -1.135204, %v577_v8  ;;  %v578_v19 = vmul.f32 %v1877_v34, %v570_v10 }
 0x110   : > { %v607_v43 = vmul.f32 %v1833_v7, %v599_v23  ;;  %v600_v45 = vadd.f32 0.27886808, %v592_v24  ;;  %v589_v24 = vmul.f32 %v1858_v44, %v581_v14  ;;  %v582_v35 = vadd.f32 -1.135204, %v574_v15 }
 0x111   : > { %v611_v31 = vadd.f32 -0.18628806, %v603_v37  ;;  %v604_v32 = vmul.f32 %v1836_v9, %v596_v38  ;;  %v593_v38 = vmul.f32 %v1867_v60, %v585_v18  ;;  %v586_v39 = vadd.f32 -1.135204, %v578_v19 }
 0x112   : > { %v615_v33 = vadd.f32 -0.18628806, %v607_v43  ;;  %v608_v6 = vmul.f32 %v1839_v11, %v600_v45  ;;  %v597_v45 = vadd.f32 0.27886808, %v589_v24  ;;  %v590_v47 = vmul.f32 %v1872_v1, %v582_v35 }
 0x113   : > { %v619_v12 = vmul.f32 %v1831_v5, %v611_v31  ;;  %v612_v13 = vadd.f32 -0.18628806, %v604_v32  ;;  %v601_v32 = vadd.f32 0.27886808, %v593_v38  ;;  %v594_v2 = vmul.f32 %v1877_v34, %v586_v39 }
 0x114   : > { %v623_v16 = vmul.f32 %v1833_v7, %v615_v33  ;;  %v616_v17 = vadd.f32 -0.18628806, %v608_v6  ;;  %v605_v6 = vmul.f32 %v1858_v44, %v597_v45  ;;  %v598_v8 = vadd.f32 0.27886808, %v590_v47 }
 0x115   : > { %v627_v20 = vadd.f32 0.09678418, %v619_v12  ;;  %v620_v23 = vmul.f32 %v1836_v9, %v612_v13  ;;  %v609_v13 = vmul.f32 %v1867_v60, %v601_v32  ;;  %v602_v14 = vadd.f32 0.27886808, %v594_v2 }
 0x116   : > { %v631_v36 = vadd.f32 0.09678418, %v623_v16  ;;  %v624_v37 = vmul.f32 %v1839_v11, %v616_v17  ;;  %v613_v17 = vadd.f32 -0.18628806, %v605_v6  ;;  %v606_v18 = vmul.f32 %v1872_v1, %v598_v8 }
 0x117   : > { %v635_v40 = vmul.f32 %v1831_v5, %v627_v20  ;;  %v628_v43 = vadd.f32 0.09678418, %v620_v23  ;;  %v617_v23 = vadd.f32 -0.18628806, %v609_v13  ;;  %v610_v24 = vmul.f32 %v1877_v34, %v602_v14 }
 0x118   : > { %v639_v62 = vmul.f32 %v1833_v7, %v631_v36  ;;  %v632_v31 = vadd.f32 0.09678418, %v624_v37  ;;  %v621_v37 = vmul.f32 %v1858_v44, %v613_v17  ;;  %v614_v38 = vadd.f32 -0.18628806, %v606_v18 }
 0x119   : > { %v643_v3 = vadd.f32 0.37409195, %v635_v40  ;;  %v636_v33 = vmul.f32 %v1836_v9, %v628_v43  ;;  %v625_v43 = vmul.f32 %v1867_v60, %v617_v23  ;;  %v618_v45 = vadd.f32 -0.18628806, %v610_v24 }
 0x11a   : > { %v647_v10 = vadd.f32 0.37409195, %v639_v62  ;;  %v640_v12 = vmul.f32 %v1839_v11, %v632_v31  ;;  %v629_v31 = vadd.f32 0.09678418, %v621_v37  ;;  %v622_v32 = vmul.f32 %v1872_v1, %v614_v38 }
 0x11b   : > { %v651_v15 = vmul.f32 %v1831_v5, %v643_v3  ;;  %v644_v16 = vadd.f32 0.37409195, %v636_v33  ;;  %v633_v33 = vadd.f32 0.09678418, %v625_v43  ;;  %v626_v6 = vmul.f32 %v1877_v34, %v618_v45 }
 0x11c   : > { %v655_v19 = vmul.f32 %v1833_v7, %v647_v10  ;;  %v648_v20 = vadd.f32 0.37409195, %v640_v12  ;;  %v637_v12 = vmul.f32 %v1858_v44, %v629_v31  ;;  %v630_v13 = vadd.f32 0.09678418, %v622_v32 }
 0x11d   : > { %v659_v35 = vadd.f32 1.0000237, %v651_v15  ;;  %v652_v36 = vmul.f32 %v1836_v9, %v644_v16  ;;  %v641_v16 = vmul.f32 %v1867_v60, %v633_v33  ;;  %v634_v17 = vadd.f32 0.09678418, %v626_v6 }
 0x11e   : > { %v663_v39 = vadd.f32 1.0000237, %v655_v19  ;;  %v656_v40 = vmul.f32 %v1839_v11, %v648_v20  ;;  %v645_v20 = vadd.f32 0.37409195, %v637_v12  ;;  %v638_v23 = vmul.f32 %v1872_v1, %v630_v13 }
 0x11f   : > { %v667_v47 = vmul.f32 %v1831_v5, %v659_v35  ;;  %v660_v62 = vadd.f32 1.0000237, %v652_v36  ;;  %v649_v36 = vadd.f32 0.37409195, %v641_v16  ;;  %v642_v37 = vmul.f32 %v1877_v34, %v634_v17 }
 0x120   : > { %v671_v2 = vmul.f32 %v1833_v7, %v663_v39  ;;  %v664_v3 = vadd.f32 1.0000237, %v656_v40  ;;  %v653_v40 = vmul.f32 %v1858_v44, %v645_v20  ;;  %v646_v43 = vadd.f32 0.37409195, %v638_v23 }
 0x121   : > { %v675_v8 = vadd.f32 -1.2655122, %v667_v47  ;;  %v668_v10 = vmul.f32 %v1836_v9, %v660_v62  ;;  %v650_v62 = vadd.f32 0.37409195, %v642_v37  ;;  %v690_v12 = vsub.f32 0.0, %v1826_v61 }
 0x122   : > { %v679_v14 = vadd.f32 -1.2655122, %v671_v2  ;;  %v672_v15 = vmul.f32 %v1839_v11, %v664_v3  ;;  %v661_v32 = vadd.f32 1.0000237, %v653_v40  ;;  %v697_v17 = vmul.f32 %v689_v4, %v1819_v58 }
 0x123   : > { %v699_v18 = vadd.f32 %v1853_v41, %v675_v8  ;;  %v676_v19 = vadd.f32 -1.2655122, %v668_v10  ;;  %v657_v41 = vmul.f32 %v1867_v60, %v649_v36  ;;  %v658_v33 = vmul.f32 %v1877_v34, %v650_v62 }
 0x124   : > { %v703_v24 = vadd.f32 %v1856_v42, %v679_v14  ;;  %v680_v35 = vadd.f32 -1.2655122, %v672_v15  ;;  %v654_v42 = vmul.f32 %v1872_v1, %v646_v43  ;;  %v686_v8 = vsub.f32 0.0, %v1822_v59 }
 0x125   : > { %v707_v38 = vmul.f32 1.442695, %v699_v18  ;;  %v700_v39 = vadd.f32 %v1862_v46, %v676_v19  ;;  %v665_v3 = vadd.f32 1.0000237, %v657_v41  ;;  %v669_v46 = vmul.f32 %v1858_v44, %v661_v32 }
 0x126   : > { %v715_v45 = vmul.f32 1.442695, %v703_v24  ;;  %v704_v47 = vadd.f32 %v1865_v48, %v680_v35  ;;  %v662_v6 = vadd.f32 1.0000237, %v654_v42  ;;  %v666_v10 = vadd.f32 1.0000237, %v658_v33 }
 0x127   : > { %1561 = vpow2.f32 %v707_v38  ;;  %v709_v31 = vmul.f32 1.442695, %v700_v39  ;;  %v673_v48 = vmul.f32 %v1867_v60, %v665_v3  ;;  %v677_v13 = vadd.f32 -1.2655122, %v669_v46 }
 0x128   : > { %1563 = vpow2.f32 %v715_v45  ;;  %v717_v2 = vmul.f32 1.442695, %v704_v47  ;;  %v693_v14 = vmul.f32 %v685_v63, %v1813_v56  ;;  %v670_v15 = vmul.f32 %v1872_v1, %v662_v6 }
 0x129   : > { %1565 = vpow2.f32 %v709_v31  ;;  %v681_v16 = vadd.f32 -1.2655122, %v673_v48  ;;  %v674_v18 = vmul.f32 %v1877_v34, %v666_v10  ;;  %v694_v23 = vmul.f32 %v686_v8, %v1822_v59 }
 0x12a   : > { %1567 = vpow2.f32 %v717_v2  ;;  %v701_v19 = vadd.f32 %v693_v14, %v677_v13  ;;  %v678_v20 = vadd.f32 -1.2655122, %v670_v15  ;;  %v698_v36 = vmul.f32 %v690_v12, %v1826_v61 }
 0x12b   : > { %v705_v24 = vadd.f32 %v697_v17, %v681_v16  ;;  %v682_v35 = vadd.f32 -1.2655122, %v674_v18  ;;  %v483_v3 = vmul.f32 0.5, %v1759_v21  ;;  %v487_v8 = vmul.f32 0.5, %v1761_v22 }
 0x12c   : > { %v711_v37 = vmul.f32 1.442695, %v701_v19  ;;  %v702_v38 = vadd.f32 %v694_v23, %v678_v20  ;;  %v484_v12 = vmul.f32 0.5, %v1763_v25  ;;  %v488_v15 = vmul.f32 0.5, %v1765_v26 }
 0x12d   : > { %v719_v56 = vmul.f32 1.442695, %v705_v24  ;;  %v706_v63 = vadd.f32 %v698_v36, %v682_v35 }
 0x12e   : > { %1569 = vpow2.f32 %v711_v37  ;;  %v713_v40 = vmul.f32 1.442695, %v702_v38 }
 0x12f   : > { %1571 = vpow2.f32 %v719_v56  ;;  %v721_v4 = vmul.f32 1.442695, %v706_v63 }
 0x130   : > { %1573 = vpow2.f32 %v713_v40 }
 0x131   : > { %v1562_v39 = vpop.eup %1561  ;;  %1575 = vpow2.f32 %v721_v4 }
 0x132   : > { %v1564_v43 = vpop.eup %1563  ;;  %v723_v58 = vmul.f32 %v1562_v39, %v1831_v5  ;;  %v489_v39 = vmul.f32 0.5, %v1797_v50  ;;  %v779_v50 = vld [vmem:[%s2236_s3] sm:$0xff] }
 0x133   : > { %v1566_v45 = vpop.eup %1565  ;;  %v727_v47 = vmul.f32 %v1564_v43, %v1833_v7  ;;  %v486_v43 = vmul.f32 0.5, %v1799_v51  ;;  %v780_v51 = vld [vmem:[%s2236_s3 + $0x8] sm:$0xff] }
 0x134   : > { %v1568_v59 = vpop.eup %1567  ;;  %v731_v41 = vsub.f32 1.0, %v723_v58  ;;  %v724_v61 = vmul.f32 %v1566_v45, %v1836_v9 }
 0x135   : > { %v735_v62 = vsub.f32 1.0, %v727_v47  ;;  %v728_v31 = vmul.f32 %v1568_v59, %v1839_v11 }
 0x136   : > { %v747_v32 = vsub.f32 0.0, %v731_v41  ;;  %v732_v42 = vsub.f32 1.0, %v724_v61 }
 0x137   : > { %v751_v2 = vsub.f32 0.0, %v735_v62  ;;  %v736_v5 = vsub.f32 1.0, %v728_v31  ;;  %v1206_v31 = vld [vmem:[%s2239_s6] sm:$0x7] }
 0x138   : > { %v755_v33 = vsel %vm739_vm2, %v731_v41, %v747_v32  ;;  %v748_v7 = vsub.f32 0.0, %v732_v42  ;;  %v1570_v27 = vpop.eup %1569  ;;  %v790_v32 = vpop.permute.xlu0 %789 }
 0x139   : > { %v763_v46 = vadd.f32 1.0, %v755_v33  ;;  %v759_v6 = vsel %vm743_vm3, %v735_v62, %v751_v2  ;;  %v752_v9 = vsub.f32 0.0, %v736_v5  ;;  %v1572_v14 = vpop.eup %1571  ;;  %v725_v29 = vmul.f32 %v1570_v27, %v1858_v44 }
 0x13a   : > { %v767_v11 = vadd.f32 1.0, %v759_v6  ;;  %v756_v48 = vsel %vm740_vm4, %v732_v42, %v748_v7  ;;  %v1574_v17 = vpop.eup %1573  ;;  %v729_v22 = vmul.f32 %v1572_v14, %v1867_v60  ;;  %v485_v44 = vmul.f32 0.5, %v1795_v49  ;;  %v795_v7 = vpop.permute.xlu1 %794 }
 0x13b   : > { %v771_v10 = vmul.f32 %v763_v46, %v483_v3  ;;  %v764_v21 = vadd.f32 1.0, %v756_v48  ;;  %v760_v13 = vsel %vm744_vm5, %v736_v5, %v752_v9  ;;  %v1576_v19 = vpop.eup %1575  ;;  %v733_v30 = vsub.f32 1.0, %v725_v29 }
 0x13c   : > { %v775_v28 = vmul.f32 %v767_v11, %v487_v8  ;;  %v768_v16 = vadd.f32 1.0, %v760_v13  ;;  %v726_v23 = vmul.f32 %v1574_v17, %v1872_v1  ;;  %v737_v24 = vsub.f32 1.0, %v729_v22 }
 0x13d   : > { %v772_v18 = vmul.f32 %v764_v21, %v484_v12  ;;  %v730_v25 = vmul.f32 %v1576_v19, %v1877_v34  ;;  %v749_v35 = vsub.f32 0.0, %v733_v30 }
 0x13e   : > { %v776_v20 = vmul.f32 %v768_v16, %v488_v15  ;;  %v734_v36 = vsub.f32 1.0, %v726_v23  ;;  %v753_v26 = vsub.f32 0.0, %v737_v24  ;;  %v800_v16 = vpop.permute.xlu0 %799 }
 0x13f   : > { %v738_v37 = vsub.f32 1.0, %v730_v25  ;;  %v757_v38 = vsel %vm741_vm6, %v733_v30, %v749_v35  ;;  %v805_v35 = vpop.permute.xlu1 %804 }
 0x140   : > { %v750_v60 = vsub.f32 0.0, %v734_v36  ;;  %v765_v56 = vadd.f32 1.0, %v757_v38  ;;  %v761_v63 = vsel %vm745_vm7, %v737_v24, %v753_v26 }
 0x141   : > { %v754_v1 = vsub.f32 0.0, %v738_v37  ;;  %v769_v34 = vadd.f32 1.0, %v761_v63 }
 0x142   : > { %v758_v40 = vsel %vm742_vm8, %v734_v36, %v750_v60  ;;  %v773_v53 = vmul.f32 %v765_v56, %v485_v44 }
 0x143   : > { %v766_v58 = vadd.f32 1.0, %v758_v40  ;;  %v762_v49 = vsel %vm746_vm9, %v738_v37, %v754_v1  ;;  %v777_v4 = vmul.f32 %v769_v34, %v489_v39 }
 0x144   : > { %v770_v45 = vadd.f32 1.0, %v762_v49  ;;  %v1490_v47 = vpack.c.bf16 %v773_v53, %v771_v10 }
 0x145   : > { %v774_v59 = vmul.f32 %v766_v58, %v486_v43  ;;  %v1494_v41 = vpack.c.bf16 %v777_v4, %v775_v28 }
 0x146   : > { %v778_v55 = vmul.f32 %v770_v45, %v490_v54 }
 0x147   : > { %v1488_v61 = vpack.c.bf16 %v774_v59, %v772_v18 }
 0x148   : > { %v1492_v62 = vpack.c.bf16 %v778_v55, %v776_v20 }
 0x149   : > { %1489 = vmatprep.subr.bf16.mxu1 %v1488_v61  ;;  %1497 = vmatprep.subr.bf16.mxu0 %v1488_v61 }
 0x14a   : > { %1491 = vmatpush1.bf16.msra.mxu1 %v1490_v47  ;;  %1499 = vmatpush1.bf16.msra.mxu0 %v1490_v47 }
 0x14b   : > { %1493 = vmatprep.subr.bf16.mxu1 %v1492_v62  ;;  %1501 = vmatprep.subr.bf16.mxu0 %v1492_v62 }
 0x14e   : > { %1495 = vmatpush1.bf16.msra.mxu1 %v1494_v41  ;;  %1503 = vmatpush1.bf16.msra.mxu0 %v1494_v41 }
 0x151   : > { %1478 = vmatmul.mubr.msk.f32.vlgmr.msra.gmra.mrb[4].mxu1 %vm807_vm10, %v779_v50  ;;  %1482 = vmatmul.mubr.msk.f32.vlgmr.msra.gmra.mrb[4].mxu0 %vm807_vm10, %v1206_v31 }
 0x152   : > { %890 = vmatprep.mubr.f32.mxu1 %v1637_v0  ;;  %1348 = vmatprep.mubr.f32.mxu0 %v1637_v0 }
 0x155   : > { %1479 = vmatmul.mubr.msk.f32.gmra.mrb[6].mxu1 %vm807_vm10, %v780_v51 }
 0x156   : > { %896 = vmatprep.mubr.f32.mxu1 %v1637_v0 }
 0x159   : > { %1480 = vmatmul.mubr.msk.f32.gmra.mrb[8].mxu1 %vm807_vm10, %v781_v52 }
 0x15a   : > { %902 = vmatprep.mubr.f32.mxu1 %v1637_v0 }
 0x15d   : > { %1481 = vmatmul.mubr.msk.f32.gmra.mrb[10].mxu1 %vm807_vm10, %v782_v57 }
 0x224   : > { %v886_v42 = vpop.f32.mrb[4].mxu1 }
 0x225   : > { %v1999_v2 = vadd.f32 %v886_v42, %v790_v32  ;;  %v888_v5 = vpop.f32.mrb[5].mxu1 }
 0x226   : > { %v2001_v3 = vadd.f32 %v888_v5, %v790_v32 }
 0x227   : > { %v2004_v33 = vmul.f32 0.70710677, %v1999_v2 }
 0x228   : > { %v2007_v46 = vmul.f32 0.70710677, %v2001_v3  ;;  %v892_v6 = vpop.f32.mrb[6].mxu1 }
 0x229   : > { %v2010_v9 = vand.u32 2147483647, %v2004_v33  ;;  %v2012_v8 = vadd.f32 %v892_v6, %v795_v7  ;;  %v894_v0 = vpop.f32.mrb[7].mxu1  ;;  %vm1165_vm11 = vcmp.ge.f32.partialorder %v2004_v33, 0.0 }
 0x22a   : > { %v2015_v11 = vand.u32 2147483647, %v2007_v46  ;;  %v2017_v48 = vadd.f32 %v894_v0, %v795_v7  ;;  %vm1166_vm12 = vcmp.ge.f32.partialorder %v2007_v46, 0.0 }
 0x22b   : > { %v933_v27 = vmul.f32 0.5, %v2010_v9  ;;  %v2021_v10 = vmul.f32 0.70710677, %v2012_v8  ;;  %v1109_v57 = vsub.f32 0.0, %v2010_v9 }
 0x22c   : > { %v934_v12 = vmul.f32 0.5, %v2015_v11  ;;  %v2025_v21 = vmul.f32 0.70710677, %v2017_v48  ;;  %v898_v13 = vpop.f32.mrb[8].mxu1  ;;  %v1110_v32 = vsub.f32 0.0, %v2015_v11 }
 0x22d   : > { %v941_v14 = vadd.f32 1.0, %v933_v27  ;;  %v2028_v28 = vand.u32 2147483647, %v2021_v10  ;;  %v900_v15 = vpop.f32.mrb[9].mxu1  ;;  %v2034_v22 = vadd.f32 %v898_v13, %v800_v16  ;;  %vm1167_vm13 = vcmp.ge.f32.partialorder %v2021_v10, 0.0 }
 0x22e   : > { %v942_v29 = vadd.f32 1.0, %v934_v12  ;;  %v2031_v17 = vand.u32 2147483647, %v2025_v21  ;;  %v2037_v20 = vadd.f32 %v900_v15, %v800_v16  ;;  %v2094_v16 = vmul.f32 %v1109_v57, %v2010_v9 }
 0x22f   : > { %1577 = vrcp.f32 %v941_v14  ;;  %v935_v18 = vmul.f32 0.5, %v2028_v28  ;;  %v2040_v24 = vmul.f32 0.70710677, %v2034_v22  ;;  %v1111_v6 = vsub.f32 0.0, %v2028_v28 }
 0x230   : > { %1579 = vrcp.f32 %v942_v29  ;;  %v936_v19 = vmul.f32 0.5, %v2031_v17  ;;  %v904_v30 = vpop.f32.mrb[10].mxu1  ;;  %v2043_v26 = vmul.f32 0.70710677, %v2037_v20  ;;  %v1112_v12 = vsub.f32 0.0, %v2031_v17 }
 0x231   : > { %v943_v23 = vadd.f32 1.0, %v935_v18  ;;  %v906_v25 = vpop.f32.mrb[11].mxu1  ;;  %v2046_v37 = vand.u32 2147483647, %v2040_v24  ;;  %v2048_v44 = vadd.f32 %v904_v30, %v805_v35  ;;  %v2098_v18 = vmul.f32 %v1110_v32, %v2015_v11 }
 0x232   : > { %v944_v36 = vadd.f32 1.0, %v936_v19  ;;  %v2051_v38 = vand.u32 2147483647, %v2043_v26  ;;  %v2053_v60 = vadd.f32 %v906_v25, %v805_v35  ;;  %v2104_v35 = vmul.f32 %v1111_v6, %v2028_v28 }
 0x233   : > { %1581 = vrcp.f32 %v943_v23  ;;  %v937_v56 = vmul.f32 0.5, %v2046_v37  ;;  %v2057_v63 = vmul.f32 0.70710677, %v2048_v44  ;;  %v2108_v9 = vmul.f32 %v1112_v12, %v2031_v17 }
 0x234   : > { %1583 = vrcp.f32 %v944_v36  ;;  %v938_v1 = vmul.f32 0.5, %v2051_v38  ;;  %v2061_v39 = vmul.f32 0.70710677, %v2053_v60  ;;  %vm1168_vm14 = vcmp.ge.f32.partialorder %v2025_v21, 0.0 }
 0x235   : > { %v945_v34 = vadd.f32 1.0, %v937_v56  ;;  %v2064_v40 = vand.u32 2147483647, %v2057_v63  ;;  %vm1169_vm15 = vcmp.ge.f32.partialorder %v2040_v24, 0.0  ;;  %vm1170_vm0 = vcmp.ge.f32.partialorder %v2043_v26, 0.0 }
 0x236   : > { %v946_v53 = vadd.f32 1.0, %v938_v1  ;;  %v2067_v43 = vand.u32 2147483647, %v2061_v39  ;;  %vm1171_vm1 = vcmp.ge.f32.partialorder %v2057_v63, 0.0  ;;  %vm1172_vm2 = vcmp.ge.f32.partialorder %v2061_v39, 0.0  ;;  %v1359_v39 = vpop.permute.xlu0 %1358 }
 0x237   : > { %1585 = vrcp.f32 %v945_v34  ;;  %v939_v49 = vmul.f32 0.5, %v2064_v40  ;;  %v915_v26 = vmul.f32 0.5, %v2048_v44  ;;  %v1205_v63 = vld [vmem:[%s2238_s5] sm:$0x7] }
 0x238   : > { %1587 = vrcp.f32 %v946_v53  ;;  %v940_v45 = vmul.f32 0.5, %v2067_v43 }
 0x239   : > { %v2069_v58 = vpop.eup %1577  ;;  %v947_v59 = vadd.f32 1.0, %v939_v49 }
 0x23a   : > { %v2072_v4 = vpop.eup %1579  ;;  %v965_v54 = vmul.f32 0.17087276, %v2069_v58  ;;  %v948_v55 = vadd.f32 1.0, %v940_v45 }
 0x23b   : > { %v966_v47 = vmul.f32 0.17087276, %v2072_v4  ;;  %1589 = vrcp.f32 %v947_v59 }
 0x23c   : > { %v973_v41 = vadd.f32 -0.82215226, %v965_v54  ;;  %1591 = vrcp.f32 %v948_v55  ;;  %v1113_v54 = vsub.f32 0.0, %v2046_v37 }
 0x23d   : > { %v2077_v61 = vpop.eup %1581  ;;  %v974_v62 = vadd.f32 -0.82215226, %v966_v47 }
 0x23e   : > { %v2079_v50 = vpop.eup %1583  ;;  %v981_v51 = vmul.f32 %v2069_v58, %v973_v41  ;;  %v967_v52 = vmul.f32 0.17087276, %v2077_v61  ;;  %v1114_v41 = vsub.f32 0.0, %v2051_v38 }
 0x23f   : > { %v982_v31 = vmul.f32 %v2072_v4, %v974_v62  ;;  %v968_v42 = vmul.f32 0.17087276, %v2079_v50 }
 0x240   : > { %v989_v5 = vadd.f32 1.4885159, %v981_v51  ;;  %v975_v7 = vadd.f32 -0.82215226, %v967_v52 }
 0x241   : > { %v990_v0 = vadd.f32 1.4885159, %v982_v31  ;;  %v976_v27 = vadd.f32 -0.82215226, %v968_v42  ;;  %v2091_v15 = vpop.eup %1585 }
 0x242   : > { %v997_v13 = vmul.f32 %v2069_v58, %v989_v5  ;;  %v983_v14 = vmul.f32 %v2077_v61, %v975_v7  ;;  %v2101_v30 = vpop.eup %1587  ;;  %v969_v36 = vmul.f32 0.17087276, %v2091_v15 }
 0x243   : > { %v998_v29 = vmul.f32 %v2072_v4, %v990_v0  ;;  %v984_v19 = vmul.f32 %v2079_v50, %v976_v27  ;;  %v970_v34 = vmul.f32 0.17087276, %v2101_v30 }
 0x244   : > { %v1005_v23 = vadd.f32 -1.135204, %v997_v13  ;;  %v991_v25 = vadd.f32 1.4885159, %v983_v14  ;;  %v977_v49 = vadd.f32 -0.82215226, %v969_v36 }
 0x245   : > { %v1006_v56 = vadd.f32 -1.135204, %v998_v29  ;;  %v992_v1 = vadd.f32 1.4885159, %v984_v19  ;;  %v2114_v45 = vpop.eup %1589  ;;  %v978_v59 = vadd.f32 -0.82215226, %v970_v34 }
 0x246   : > { %v1013_v11 = vmul.f32 %v2069_v58, %v1005_v23  ;;  %v999_v53 = vmul.f32 %v2077_v61, %v991_v25  ;;  %v2119_v17 = vpop.eup %1591  ;;  %v985_v51 = vmul.f32 %v2091_v15, %v977_v49  ;;  %v971_v52 = vmul.f32 0.17087276, %v2114_v45 }
 0x247   : > { %v1014_v28 = vmul.f32 %v2072_v4, %v1006_v56  ;;  %v1000_v47 = vmul.f32 %v2079_v50, %v992_v1  ;;  %v986_v32 = vmul.f32 %v2101_v30, %v978_v59  ;;  %v972_v42 = vmul.f32 0.17087276, %v2119_v17 }
 0x248   : > { %v1021_v55 = vadd.f32 0.27886808, %v1013_v11  ;;  %v1007_v62 = vadd.f32 -1.135204, %v999_v53  ;;  %v993_v6 = vadd.f32 1.4885159, %v985_v51 }
 0x249   : > { %v1022_v57 = vadd.f32 0.27886808, %v1014_v28  ;;  %v1008_v31 = vadd.f32 -1.135204, %v1000_v47  ;;  %v979_v0 = vadd.f32 -0.82215226, %v971_v52 }
 0x24a   : > { %v1029_v5 = vmul.f32 %v2069_v58, %v1021_v55  ;;  %v1015_v7 = vmul.f32 %v2077_v61, %v1007_v62  ;;  %v994_v13 = vadd.f32 1.4885159, %v986_v32  ;;  %v980_v14 = vadd.f32 -0.82215226, %v972_v42 }
 0x24b   : > { %v1030_v27 = vmul.f32 %v2072_v4, %v1022_v57  ;;  %v1016_v12 = vmul.f32 %v2079_v50, %v1008_v31  ;;  %v1001_v23 = vmul.f32 %v2091_v15, %v993_v6  ;;  %v987_v25 = vmul.f32 %v2114_v45, %v979_v0 }
 0x24c   : > { %v1037_v29 = vadd.f32 -0.18628806, %v1029_v5  ;;  %v1023_v19 = vadd.f32 0.27886808, %v1015_v7  ;;  %v1002_v1 = vmul.f32 %v2101_v30, %v994_v13  ;;  %v988_v34 = vmul.f32 %v2119_v17, %v980_v14 }
 0x24d   : > { %v1038_v36 = vadd.f32 -0.18628806, %v1030_v27  ;;  %v1024_v56 = vadd.f32 0.27886808, %v1016_v12  ;;  %v1009_v49 = vadd.f32 -1.135204, %v1001_v23 }
 0x24e   : > { %v1045_v11 = vmul.f32 %v2069_v58, %v1037_v29  ;;  %v1031_v53 = vmul.f32 %v2077_v61, %v1023_v19  ;;  %v995_v28 = vadd.f32 1.4885159, %v987_v25  ;;  %v1010_v55 = vadd.f32 -1.135204, %v1002_v1 }
 0x24f   : > { %v1046_v47 = vmul.f32 %v2072_v4, %v1038_v36  ;;  %v1032_v59 = vmul.f32 %v2079_v50, %v1024_v56  ;;  %v996_v62 = vadd.f32 1.4885159, %v988_v34  ;;  %v1017_v57 = vmul.f32 %v2091_v15, %v1009_v49 }
 0x250   : > { %v1053_v51 = vadd.f32 0.09678418, %v1045_v11  ;;  %v1039_v52 = vadd.f32 -0.18628806, %v1031_v53  ;;  %v1003_v31 = vmul.f32 %v2114_v45, %v995_v28  ;;  %v1018_v5 = vmul.f32 %v2101_v30, %v1010_v55 }
 0x251   : > { %v1054_v32 = vadd.f32 0.09678418, %v1046_v47  ;;  %v1040_v42 = vadd.f32 -0.18628806, %v1032_v59  ;;  %v1004_v7 = vmul.f32 %v2119_v17, %v996_v62  ;;  %v1025_v27 = vadd.f32 0.27886808, %v1017_v57 }
 0x252   : > { %v1061_v6 = vmul.f32 %v2069_v58, %v1053_v51  ;;  %v1047_v0 = vmul.f32 %v2077_v61, %v1039_v52  ;;  %v1011_v12 = vadd.f32 -1.135204, %v1003_v31  ;;  %v1026_v29 = vadd.f32 0.27886808, %v1018_v5 }
 0x253   : > { %v1062_v13 = vmul.f32 %v2072_v4, %v1054_v32  ;;  %v1048_v14 = vmul.f32 %v2079_v50, %v1040_v42  ;;  %v1012_v19 = vadd.f32 -1.135204, %v1004_v7  ;;  %v1033_v36 = vmul.f32 %v2091_v15, %v1025_v27 }
 0x254   : > { %v1069_v23 = vadd.f32 0.37409195, %v1061_v6  ;;  %v1055_v25 = vadd.f32 0.09678418, %v1047_v0  ;;  %v1019_v56 = vmul.f32 %v2114_v45, %v1011_v12  ;;  %v1034_v11 = vmul.f32 %v2101_v30, %v1026_v29 }
 0x255   : > { %v1070_v1 = vadd.f32 0.37409195, %v1062_v13  ;;  %v1056_v34 = vadd.f32 0.09678418, %v1048_v14  ;;  %v1020_v53 = vmul.f32 %v2119_v17, %v1012_v19  ;;  %v1041_v47 = vadd.f32 -0.18628806, %v1033_v36 }
 0x256   : > { %v1077_v49 = vmul.f32 %v2069_v58, %v1069_v23  ;;  %v1063_v28 = vmul.f32 %v2077_v61, %v1055_v25  ;;  %v1027_v59 = vadd.f32 0.27886808, %v1019_v56  ;;  %v1042_v51 = vadd.f32 -0.18628806, %v1034_v11 }
 0x257   : > { %v1078_v55 = vmul.f32 %v2072_v4, %v1070_v1  ;;  %v1064_v62 = vmul.f32 %v2079_v50, %v1056_v34  ;;  %v1028_v52 = vadd.f32 0.27886808, %v1020_v53  ;;  %v1049_v32 = vmul.f32 %v2091_v15, %v1041_v47 }
 0x258   : > { %v1085_v57 = vadd.f32 1.0000237, %v1077_v49  ;;  %v1071_v31 = vadd.f32 0.37409195, %v1063_v28  ;;  %v1035_v42 = vmul.f32 %v2114_v45, %v1027_v59  ;;  %v1050_v6 = vmul.f32 %v2101_v30, %v1042_v51 }
 0x259   : > { %v1086_v5 = vadd.f32 1.0000237, %v1078_v55  ;;  %v1072_v7 = vadd.f32 0.37409195, %v1064_v62  ;;  %v1036_v0 = vmul.f32 %v2119_v17, %v1028_v52  ;;  %v1057_v13 = vadd.f32 0.09678418, %v1049_v32 }
 0x25a   : > { %v1093_v27 = vmul.f32 %v2069_v58, %v1085_v57  ;;  %v1079_v12 = vmul.f32 %v2077_v61, %v1071_v31  ;;  %v1043_v14 = vadd.f32 -0.18628806, %v1035_v42  ;;  %v1058_v23 = vadd.f32 0.09678418, %v1050_v6 }
 0x25b   : > { %v1094_v29 = vmul.f32 %v2072_v4, %v1086_v5  ;;  %v1080_v19 = vmul.f32 %v2079_v50, %v1072_v7  ;;  %v1044_v25 = vadd.f32 -0.18628806, %v1036_v0  ;;  %v1065_v1 = vmul.f32 %v2091_v15, %v1057_v13 }
 0x25c   : > { %v1101_v36 = vadd.f32 -1.2655122, %v1093_v27  ;;  %v1087_v56 = vadd.f32 1.0000237, %v1079_v12  ;;  %v1051_v34 = vmul.f32 %v2114_v45, %v1043_v14  ;;  %v1066_v49 = vmul.f32 %v2101_v30, %v1058_v23 }
 0x25d   : > { %v1102_v11 = vadd.f32 -1.2655122, %v1094_v29  ;;  %v1088_v53 = vadd.f32 1.0000237, %v1080_v19  ;;  %v1052_v28 = vmul.f32 %v2119_v17, %v1044_v25  ;;  %v1073_v55 = vadd.f32 0.37409195, %v1065_v1 }
 0x25e   : > { %v1125_v47 = vadd.f32 %v2094_v16, %v1101_v36  ;;  %v1095_v59 = vmul.f32 %v2077_v61, %v1087_v56  ;;  %v1059_v62 = vadd.f32 0.09678418, %v1051_v34  ;;  %v1074_v57 = vadd.f32 0.37409195, %v1066_v49 }
 0x25f   : > { %v1126_v51 = vadd.f32 %v2098_v18, %v1102_v11  ;;  %v1096_v52 = vmul.f32 %v2079_v50, %v1088_v53  ;;  %v1060_v31 = vadd.f32 0.09678418, %v1052_v28  ;;  %v1081_v5 = vmul.f32 %v2091_v15, %v1073_v55 }
 0x260   : > { %v1133_v32 = vmul.f32 1.442695, %v1125_v47  ;;  %v1103_v42 = vadd.f32 -1.2655122, %v1095_v59  ;;  %v1067_v7 = vmul.f32 %v2114_v45, %v1059_v62  ;;  %v1082_v16 = vmul.f32 %v2101_v30, %v1074_v57 }
 0x261   : > { %v1135_v6 = vmul.f32 1.442695, %v1126_v51  ;;  %v1104_v0 = vadd.f32 -1.2655122, %v1096_v52  ;;  %v1068_v27 = vmul.f32 %v2119_v17, %v1060_v31  ;;  %v1089_v18 = vadd.f32 1.0000237, %v1081_v5 }
 0x262   : > { %1593 = vpow2.f32 %v1133_v32  ;;  %v1127_v12 = vadd.f32 %v2104_v35, %v1103_v42  ;;  %v1075_v13 = vadd.f32 0.37409195, %v1067_v7  ;;  %v1090_v29 = vadd.f32 1.0000237, %v1082_v16 }
 0x263   : > { %1595 = vpow2.f32 %v1135_v6  ;;  %v1128_v14 = vadd.f32 %v2108_v9, %v1104_v0  ;;  %v1076_v19 = vadd.f32 0.37409195, %v1068_v27  ;;  %v1097_v25 = vmul.f32 %v2091_v15, %v1089_v18 }
 0x264   : > { %v1137_v23 = vmul.f32 1.442695, %v1127_v12  ;;  %v1121_v36 = vmul.f32 %v1113_v54, %v2046_v37  ;;  %v1083_v56 = vmul.f32 %v2114_v45, %v1075_v13  ;;  %v1098_v34 = vmul.f32 %v2101_v30, %v1090_v29 }
 0x265   : > { %v1139_v1 = vmul.f32 1.442695, %v1128_v14  ;;  %v1122_v35 = vmul.f32 %v1114_v41, %v2051_v38  ;;  %v1084_v9 = vmul.f32 %v2119_v17, %v1076_v19  ;;  %v1105_v11 = vadd.f32 -1.2655122, %v1097_v25 }
 0x266   : > { %1597 = vpow2.f32 %v1137_v23  ;;  %v1091_v53 = vadd.f32 1.0000237, %v1083_v56  ;;  %v1115_v49 = vsub.f32 0.0, %v2064_v40  ;;  %v1106_v28 = vadd.f32 -1.2655122, %v1098_v34 }
 0x267   : > { %1599 = vpow2.f32 %v1139_v1  ;;  %v1092_v47 = vadd.f32 1.0000237, %v1084_v9  ;;  %v1116_v37 = vsub.f32 0.0, %v2067_v43  ;;  %v1129_v54 = vadd.f32 %v1121_v36, %v1105_v11 }
 0x268   : > { %v1099_v59 = vmul.f32 %v2114_v45, %v1091_v53  ;;  %v1130_v55 = vadd.f32 %v1122_v35, %v1106_v28  ;;  %v1123_v41 = vmul.f32 %v1115_v49, %v2064_v40  ;;  %v909_v23 = vmul.f32 0.5, %v1999_v2 }
 0x269   : > { %v1100_v62 = vmul.f32 %v2119_v17, %v1092_v47  ;;  %v1141_v51 = vmul.f32 1.442695, %v1129_v54  ;;  %v1124_v31 = vmul.f32 %v1116_v37, %v2067_v43  ;;  %v910_v1 = vmul.f32 0.5, %v2001_v3 }
 0x26a   : > { %v1107_v38 = vadd.f32 -1.2655122, %v1099_v59  ;;  %v1143_v52 = vmul.f32 1.442695, %v1130_v55  ;;  %v911_v2 = vmul.f32 0.5, %v2012_v8  ;;  %v912_v47 = vmul.f32 0.5, %v2017_v48 }
 0x26b   : > { %v1108_v57 = vadd.f32 -1.2655122, %v1100_v62  ;;  %1601 = vpow2.f32 %v1141_v51 }
 0x26c   : > { %v1594_v32 = vpop.eup %1593  ;;  %v1131_v42 = vadd.f32 %v1123_v41, %v1107_v38  ;;  %1603 = vpow2.f32 %v1143_v52 }
 0x26d   : > { %v1596_v5 = vpop.eup %1595  ;;  %v1149_v7 = vmul.f32 %v1594_v32, %v2069_v58  ;;  %v1132_v6 = vadd.f32 %v1124_v31, %v1108_v57  ;;  %v913_v57 = vmul.f32 0.5, %v2034_v22 }
 0x26e   : > { %v1150_v0 = vmul.f32 %v1596_v5, %v2072_v4  ;;  %v1145_v16 = vmul.f32 1.442695, %v1131_v42  ;;  %v914_v5 = vmul.f32 0.5, %v2037_v20 }
 0x26f   : > { %v1157_v27 = vsub.f32 1.0, %v1149_v7  ;;  %v1147_v12 = vmul.f32 1.442695, %v1132_v6 }
 0x270   : > { %v1598_v18 = vpop.eup %1597  ;;  %v1158_v13 = vsub.f32 1.0, %v1150_v0  ;;  %1605 = vpow2.f32 %v1145_v16 }
 0x271   : > { %v1600_v40 = vpop.eup %1599  ;;  %v1173_v14 = vsub.f32 0.0, %v1157_v27  ;;  %v1151_v43 = vmul.f32 %v1598_v18, %v2077_v61  ;;  %1607 = vpow2.f32 %v1147_v12 }
 0x272   : > { %v1174_v29 = vsub.f32 0.0, %v1158_v13  ;;  %v1152_v58 = vmul.f32 %v1600_v40, %v2079_v50 }
 0x273   : > { %v1181_v19 = vsel %vm1165_vm11, %v1157_v27, %v1173_v14  ;;  %v1159_v4 = vsub.f32 1.0, %v1151_v43  ;;  %v916_v27 = vmul.f32 0.5, %v2053_v60 }
 0x274   : > { %v1189_v25 = vadd.f32 1.0, %v1181_v19  ;;  %v1182_v36 = vsel %vm1166_vm12, %v1158_v13, %v1174_v29  ;;  %v1160_v56 = vsub.f32 1.0, %v1152_v58 }
 0x275   : > { %v1190_v34 = vadd.f32 1.0, %v1182_v36  ;;  %v1175_v35 = vsub.f32 0.0, %v1159_v4  ;;  %v1602_v61 = vpop.eup %1601 }
 0x276   : > { %v1197_v9 = vmul.f32 %v1189_v25, %v909_v23  ;;  %v1176_v33 = vsub.f32 0.0, %v1160_v56  ;;  %v1604_v11 = vpop.eup %1603  ;;  %v1153_v46 = vmul.f32 %v1602_v61, %v2091_v15 }
 0x277   : > { %v1198_v50 = vmul.f32 %v1190_v34, %v910_v1  ;;  %v1183_v53 = vsel %vm1167_vm13, %v1159_v4, %v1175_v35  ;;  %v1154_v3 = vmul.f32 %v1604_v11, %v2101_v30 }
 0x278   : > { %v1191_v49 = vadd.f32 1.0, %v1183_v53  ;;  %v1184_v28 = vsel %vm1168_vm14, %v1160_v56, %v1176_v33  ;;  %v1161_v54 = vsub.f32 1.0, %v1153_v46 }
 0x279   : > { %v1192_v37 = vadd.f32 1.0, %v1184_v28  ;;  %v1162_v55 = vsub.f32 1.0, %v1154_v3 }
 0x27a   : > { %v1606_v59 = vpop.eup %1605  ;;  %v1199_v10 = vmul.f32 %v1191_v49, %v911_v2  ;;  %v1177_v38 = vsub.f32 0.0, %v1161_v54 }
 0x27b   : > { %v1608_v62 = vpop.eup %1607  ;;  %v1200_v51 = vmul.f32 %v1192_v37, %v912_v47  ;;  %v1155_v21 = vmul.f32 %v1606_v59, %v2114_v45  ;;  %v1178_v8 = vsub.f32 0.0, %v1162_v55 }
 0x27c   : > { %v1506_v41 = vpack.c.bf16 %v1199_v10, %v1197_v9  ;;  %v1156_v15 = vmul.f32 %v1608_v62, %v2119_v17  ;;  %v1185_v52 = vsel %vm1169_vm15, %v1161_v54, %v1177_v38 }
 0x27d   : > { %v1163_v48 = vsub.f32 1.0, %v1155_v21  ;;  %v1504_v30 = vpack.c.bf16 %v1200_v51, %v1198_v50  ;;  %v1193_v31 = vadd.f32 1.0, %v1185_v52  ;;  %v1186_v32 = vsel %vm1170_vm0, %v1162_v55, %v1178_v8 }
 0x27e   : > { %v1164_v42 = vsub.f32 1.0, %v1156_v15  ;;  %v1194_v7 = vadd.f32 1.0, %v1186_v32 }
 0x27f   : > { %v1179_v45 = vsub.f32 0.0, %v1163_v48  ;;  %1505 = vmatprep.subr.bf16.mxu0 %v1504_v30  ;;  %v1201_v6 = vmul.f32 %v1193_v31, %v913_v57 }
 0x280   : > { %v1180_v24 = vsub.f32 0.0, %v1164_v42  ;;  %1507 = vmatpush1.bf16.msra.mxu0 %v1506_v41  ;;  %v1202_v17 = vmul.f32 %v1194_v7, %v914_v5 }
 0x281   : > { %v1187_v0 = vsel %vm1171_vm1, %v1163_v48, %v1179_v45 }
 0x282   : > { %v1195_v22 = vadd.f32 1.0, %v1187_v0  ;;  %v1188_v16 = vsel %vm1172_vm2, %v1164_v42, %v1180_v24 }
 0x283   : > { %v1196_v12 = vadd.f32 1.0, %v1188_v16 }
 0x284   : > { %v1203_v20 = vmul.f32 %v1195_v22, %v915_v26 }
 0x285   : > { %v1204_v18 = vmul.f32 %v1196_v12, %v916_v27 }
 0x286   : > { %v1510_v13 = vpack.c.bf16 %v1203_v20, %v1201_v6 }
 0x287   : > { %v1508_v40 = vpack.c.bf16 %v1204_v18, %v1202_v17 }
 0x289   : > { %1509 = vmatprep.subr.bf16.mxu0 %v1508_v40 }
 0x28a   : > { %1511 = vmatpush1.bf16.msra.mxu0 %v1510_v13 }
 0x28d   : > { %1483 = vmatmul.mubr.msk.f32.vlgmr.msra.gmra.mrb[4].mxu0 %vm807_vm10, %v1205_v63 }
 0x360   : > { %v1350_v44 = vpop.f32.mrb[4].mxu0 }
 0x361   : > { %v1361_v14 = vadd.f32 %v1359_v39, %v1350_v44  ;;  %v1352_v43 = vpop.f32.mrb[5].mxu0 }
 0x362   : > { %v1362_v29 = vadd.f32 %v1359_v39, %v1352_v43 }
 0x363   : > { %v1363_v60 = vmul.f32 0.5, %v1361_v14 }
 0x364   : > { %v1364_v58 = vmul.f32 0.5, %v1362_v29 }
 0x365   : > { %1609 = vtanh.f32 %v1363_v60 }
 0x366   : > { %1611 = vtanh.f32 %v1364_v58 }
 0x36f   : > { %v1610_v19 = vpop.eup %1609 }
 0x370   : > { %v1612_v4 = vpop.eup %1611  ;;  %v1367_v23 = vmul.f32 0.5, %v1610_v19 }
 0x371   : > { %v1368_v25 = vmul.f32 0.5, %v1612_v4 }
 0x372   : > { %v1369_v36 = vadd.f32 0.5, %v1367_v23 }
 0x373   : > { %v1370_v56 = vadd.f32 0.5, %v1368_v25 }
 0x375   : > { %v1373_v1 = vcombine.low %v1369_v36, %v1370_v56 }
 0x377   : > { %1375 = vst [vmem:[%s343_s19] sm:$0x77] %v1373_v1 }
 0x378 PF: > { %s18_s29 = sadd.s32 1, %s1635_s29   ;;  %s2242_s27 = smov %s1631_s28 }
 0x379   : > { %p15_p5 = scmp.ge.s32.totalorder %s18_s29, 4   ;;  %s2243_s28 = smov %s2245_s30 }
 0x37b   :  { %17 = sbr.rel (!%p15_p5) target bundleno = 2 (0x2), region = 82 }

</bundles_post_ra>
